<compile_context>
chip_gen: v6e
topology: v6e:2x2x1
jax: 0.10.0
libtpu: 0.0.40
codegen_flags: <defaults>
</compile_context>

<pallas_src>
import functools

import jax
import jax.numpy as jnp
from jax.experimental import pallas as pl
from jax.experimental.pallas import tpu as pltpu


def _round_up(x, m):
    return ((x + m - 1) // m) * m


def make_fused_lstm_head_kernel(num_layers, T, Bp, H, G4):
    """Kernel refs: x2d, (wih_p, whh_p, b_p) * L, w1_p, b1_p, w2_p, b2_p, out[, ys]."""
    multi_layer = num_layers > 1

    def kernel(*refs):
        it = iter(refs)
        x_ref = next(it)
        layer_refs = [(next(it), next(it), next(it)) for _ in range(num_layers)]
        w1_ref, b1_ref, w2_ref, b2_ref = next(it), next(it), next(it), next(it)
        out_ref = next(it)
        ys_ref = next(it) if multi_layer else None

        # Lane mask selecting the `g` gate (tanh) inside the packed [i|f|g|o] slab.
        lane = jax.lax.broadcasted_iota(jnp.int32, (Bp, G4), 1)
        g_lane = (lane >= 2 * H) & (lane < 3 * H)

        x_rows = x_ref[...]                                   # (T*Bp, in_dim), time-major rows
        h_finals = []
        for l, (wih_ref, whh_ref, b_ref) in enumerate(layer_refs):
            wih = wih_ref[...]                                # (in_dim, G4)
            whh = whh_ref[...]                                # (H,      G4)
            bias = b_ref[...]                                 # (1,      G4) f32 (b_ih + b_hh)

            # Hoisted input projection: one tall MXU matmul over all timesteps,
            # bias folded in once (no per-step broadcast/add).
            gx = jnp.dot(x_rows.astype(wih.dtype), wih,
                         preferred_element_type=jnp.float32) + bias        # (T*Bp, G4)

            h = jnp.zeros((Bp, H), jnp.float32)
            c = jnp.zeros((Bp, H), jnp.float32)
            collect_seq = l + 1 < num_layers

            # Statically unrolled time recurrence; h/c stay vreg resident, only the
            # tiny (Bp,H)x(H,G4) matmul is serialized.
            for t in range(T):
                g = gx[t * Bp:(t + 1) * Bp, :] + jnp.dot(
                    h.astype(whh.dtype), whh, preferred_element_type=jnp.float32)
                # One sigmoid pass + one tanh pass over the packed slab (lane-masked
                # select) instead of four per-gate activations.
                act = jnp.where(g_lane, jnp.tanh(g), jax.nn.sigmoid(g))     # (Bp, G4)
                i_g = act[:, 0 * H:1 * H]
                f_g = act[:, 1 * H:2 * H]
                g_g = act[:, 2 * H:3 * H]
                o_g = act[:, 3 * H:4 * H]
                c = f_g * c + i_g * g_g
                h = o_g * jnp.tanh(c)
                if collect_seq:
                    ys_ref[t] = h                            # VMEM scratch, bounded live range

            if collect_seq:
                # Next layer's time-major input rows, read back from on-chip scratch
                # (gx above is already materialized before these writes happen).
                x_rows = ys_ref[...].reshape(T * Bp, H)
            h_finals.append(h)

        # hn.view(-1, H): layer-major, then batch (matches PyTorch).
        hn = h_finals[0] if num_layers == 1 else jnp.concatenate(h_finals, axis=0)

        # Fused head: relu -> fc_1 -> relu -> fc  (lane-dense padded output slab).
        w1 = w1_ref[...]
        w2 = w2_ref[...]
        z = jnp.maximum(hn, 0.0)
        z = jnp.dot(z.astype(w1.dtype), w1,
                    preferred_element_type=jnp.float32) + b1_ref[...]
        z = jnp.maximum(z, 0.0)
        out = jnp.dot(z.astype(w2.dtype), w2,
                      preferred_element_type=jnp.float32) + b2_ref[...]
        out_ref[...] = out.astype(out_ref.dtype)

    return kernel


def _full_spec(a):
    nd = a.ndim
    return pl.BlockSpec(a.shape, lambda: (0,) * nd)


def run_fused_lstm_head(x2d, lstm_params, head_params, *, num_layers, T, Bp, H, G4, Cp):
    inputs = [x2d]
    for p in lstm_params:
        inputs.extend(p)
    inputs.extend(head_params)

    scratch_shapes = []
    scratch_bytes = 0
    if num_layers > 1:
        scratch_shapes.append(pltpu.VMEM((T, Bp, H), jnp.float32))
        scratch_bytes = T * Bp * H * 4

    out_rows = num_layers * Bp
    out_bytes = out_rows * Cp * 4
    in_bytes = sum(int(a.size) * a.dtype.itemsize for a in inputs)
    gx_bytes = T * Bp * G4 * 4
    # Explicit scoped-VMEM budget (default 16/32 MiB limits would bite at real H).
    resident = in_bytes + out_bytes + scratch_bytes + 2 * gx_bytes
    vmem_limit = int(min(max(2 * resident, 8 << 20), 100 << 20))

    kernel = make_fused_lstm_head_kernel(num_layers, T, Bp, H, G4)
    return pl.pallas_call(
        kernel,
        out_shape=jax.ShapeDtypeStruct((out_rows, Cp), jnp.float32),
        in_specs=[_full_spec(a) for a in inputs],
        out_specs=pl.BlockSpec((out_rows, Cp), lambda: (0, 0)),
        scratch_shapes=scratch_shapes,
        compiler_params=pltpu.CompilerParams(vmem_limit_bytes=vmem_limit),
    )(*inputs)


class LSTM1Pallas:
    """Mirrors LSTM1.forward (batch_first nn.LSTM -> relu -> fc_1 -> relu -> fc)."""

    FC1 = 128  # width of fc_1 in the reference module (nn.Linear(hidden_size, 128))

    def __init__(self, num_classes, input_size, hidden_size, num_layers, seq_length,
                 key, param_dtype=jnp.float32):
        self.num_classes = num_classes
        self.input_size = input_size
        self.hidden_size = hidden_size
        self.num_layers = num_layers
        self.seq_length = seq_length
        self.param_dtype = param_dtype

        H = hidden_size
        self.G4 = _round_up(4 * H, 128)        # packed gate lanes [i|f|g|o] + zero tail
        self.Cp = _round_up(num_classes, 128)  # lane-dense head output
        G4, Cp = self.G4, self.Cp

        bound = 1.0 / float(H) ** 0.5
        keys = jax.random.split(key, 4 * num_layers + 4)
        ki = iter(range(len(keys)))

        self.raw_lstm = []     # unpadded f32 params (used by the pure-JAX reference)
        self.lstm_params = []  # packed / padded kernel params
        for l in range(num_layers):
            in_dim = input_size if l == 0 else hidden_size
            w_ih = jax.random.uniform(keys[next(ki)], (4 * H, in_dim),
                                      minval=-bound, maxval=bound, dtype=jnp.float32)
            w_hh = jax.random.uniform(keys[next(ki)], (4 * H, H),
                                      minval=-bound, maxval=bound, dtype=jnp.float32)
            b_ih = jax.random.uniform(keys[next(ki)], (4 * H,),
                                      minval=-bound, maxval=bound, dtype=jnp.float32)
            b_hh = jax.random.uniform(keys[next(ki)], (4 * H,),
                                      minval=-bound, maxval=bound, dtype=jnp.float32)
            self.raw_lstm.append((w_ih, w_hh, b_ih, b_hh))

            wih_p = jnp.pad(w_ih.T, ((0, 0), (0, G4 - 4 * H))).astype(param_dtype)
            whh_p = jnp.pad(w_hh.T, ((0, 0), (0, G4 - 4 * H))).astype(param_dtype)
            b_p = jnp.pad(b_ih + b_hh, (0, G4 - 4 * H)).reshape(1, G4)  # stays f32
            self.lstm_params.append((wih_p, whh_p, b_p))

        f1 = self.FC1
        b1b = 1.0 / float(H) ** 0.5
        w1 = jax.random.uniform(keys[next(ki)], (f1, H),
                                minval=-b1b, maxval=b1b, dtype=jnp.float32)
        b1 = jax.random.uniform(keys[next(ki)], (f1,),
                                minval=-b1b, maxval=b1b, dtype=jnp.float32)
        b2b = 1.0 / float(f1) ** 0.5
        w2 = jax.random.uniform(keys[next(ki)], (num_classes, f1),
                                minval=-b2b, maxval=b2b, dtype=jnp.float32)
        b2 = jax.random.uniform(keys[next(ki)], (num_classes,),
                                minval=-b2b, maxval=b2b, dtype=jnp.float32)
        self.raw_head = (w1, b1, w2, b2)

        self.head_params = (
            w1.T.astype(param_dtype),                                            # (H, 128)
            b1.reshape(1, f1),                                                   # (1, 128) f32
            jnp.pad(w2.T, ((0, 0), (0, Cp - num_classes))).astype(param_dtype),  # (128, Cp)
            jnp.pad(b2, (0, Cp - num_classes)).reshape(1, Cp),                   # (1, Cp) f32
        )

    @functools.partial(jax.jit, static_argnums=0)
    def forward(self, x):
        # x: (B, T, input_size), batch_first like PyTorch.
        B, T, _ = x.shape
        Bp = _round_up(B, 8)                       # sublane-aligned batch (zero-padded rows)
        xp = jnp.pad(x, ((0, Bp - B), (0, 0), (0, 0)))
        # time-major rows: row r = t*Bp + b -> all per-step slices start on 8-sublane bounds.
        x2d = jnp.transpose(xp, (1, 0, 2)).reshape(T * Bp, self.input_size)
        out_p = run_fused_lstm_head(
            x2d, self.lstm_params, self.head_params,
            num_layers=self.num_layers, T=T, Bp=Bp, H=self.hidden_size,
            G4=self.G4, Cp=self.Cp)
        out = out_p.reshape(self.num_layers, Bp, self.Cp)[:, :B, :self.num_classes]
        return out.reshape(self.num_layers * B, self.num_classes)


def reference_forward(model, x):
    """Pure-JAX (non-Pallas) reference of LSTM1.forward, for verification."""
    hp = jax.lax.Precision.HIGHEST
    B, T, _ = x.shape
    H = model.hidden_size
    layer_in = x
    h_finals = []
    for (w_ih, w_hh, b_ih, b_hh) in model.raw_lstm:
        h = jnp.zeros((B, H), jnp.float32)
        c = jnp.zeros((B, H), jnp.float32)
        outs = []
        for t in range(T):
            g = (jnp.dot(layer_in[:, t, :], w_ih.T, precision=hp) + b_ih
                 + jnp.dot(h, w_hh.T, precision=hp) + b_hh)
            i_g = jax.nn.sigmoid(g[:, 0:H])
            f_g = jax.nn.sigmoid(g[:, H:2 * H])
            g_g = jnp.tanh(g[:, 2 * H:3 * H])
            o_g = jax.nn.sigmoid(g[:, 3 * H:4 * H])
            c = f_g * c + i_g * g_g
            h = o_g * jnp.tanh(c)
            outs.append(h)
        layer_in = jnp.stack(outs, axis=1)
        h_finals.append(h)
    hn = jnp.concatenate(h_finals, axis=0)
    w1, b1, w2, b2 = model.raw_head
    z = jnp.dot(jnp.maximum(hn, 0.0), w1.T, precision=hp) + b1
    z = jnp.maximum(z, 0.0)
    return jnp.dot(z, w2.T, precision=hp) + b2


if __name__ == "__main__":
    key = jax.random.PRNGKey(0)
    k_param1, k_param2, k_x = jax.random.split(key, 3)

    num_classes, input_size, hidden_size, num_layers, seq_length = 10, 4, 32, 1, 8
    batch = 2

    x = jax.random.normal(k_x, (batch, seq_length, input_size), dtype=jnp.float32)

    # Single-layer config (default module shapes).
    model = LSTM1Pallas(num_classes, input_size, hidden_size, num_layers, seq_length,
                        k_param1)
    out = model.forward(x)
    jax.block_until_ready(out)
    assert out.shape == (num_layers * batch, num_classes), out.shape
    ref = reference_forward(model, x)
    assert jnp.allclose(out, ref, rtol=5e-3, atol=5e-3), \
        float(jnp.max(jnp.abs(out - ref)))

    # Two-layer config: exercises the inter-layer VMEM ys scratch path.
    model2 = LSTM1Pallas(num_classes, input_size, hidden_size, 2, seq_length, k_param2)
    out2 = model2.forward(x)
    jax.block_until_ready(out2)
    assert out2.shape == (2 * batch, num_classes), out2.shape
    ref2 = reference_forward(model2, x)
    assert jnp.allclose(out2, ref2, rtol=5e-3, atol=5e-3), \
        float(jnp.max(jnp.abs(out2 - ref2)))

    print("KERNEL_OK")
</pallas_src>

<mosaic_0001>
module attributes {stable_mosaic.version = 11 : i64} {
  func.func @kernel(%arg0: memref<64x4xf32, #tpu.memory_space<vmem>>, %arg1: memref<4x128xf32, #tpu.memory_space<vmem>>, %arg2: memref<32x128xf32, #tpu.memory_space<vmem>>, %arg3: memref<1x128xf32, #tpu.memory_space<vmem>>, %arg4: memref<32x128xf32, #tpu.memory_space<vmem>>, %arg5: memref<1x128xf32, #tpu.memory_space<vmem>>, %arg6: memref<128x128xf32, #tpu.memory_space<vmem>>, %arg7: memref<1x128xf32, #tpu.memory_space<vmem>>, %arg8: memref<8x128xf32, #tpu.memory_space<vmem>>) attributes {dimension_semantics = [], scalar_prefetch = 0 : i64, scratch_operands = 0 : i64, tpu.core_type = #tpu.core_type<tc>} {
    %0 = tpu.iota {dimensions = array<i32: 1>} : vector<8x128xi32>
    %c64_i32 = arith.constant 64 : i32
    %1 = vector.broadcast %c64_i32 : i32 to vector<8x128xi32>
    %2 = arith.cmpi sge, %0, %1 : vector<8x128xi32>
    %c96_i32 = arith.constant 96 : i32
    %3 = vector.broadcast %c96_i32 : i32 to vector<8x128xi32>
    %4 = arith.cmpi slt, %0, %3 : vector<8x128xi32>
    %5 = arith.andi %2, %4 : vector<8x128xi1>
    %c0 = arith.constant 0 : index
    %c0_0 = arith.constant 0 : index
    %6 = vector.load %arg0[%c0, %c0_0] : memref<64x4xf32, #tpu.memory_space<vmem>>, vector<64x4xf32>
    %c0_1 = arith.constant 0 : index
    %c0_2 = arith.constant 0 : index
    %7 = vector.load %arg1[%c0_1, %c0_2] : memref<4x128xf32, #tpu.memory_space<vmem>>, vector<4x128xf32>
    %c0_3 = arith.constant 0 : index
    %c0_4 = arith.constant 0 : index
    %8 = vector.load %arg2[%c0_3, %c0_4] : memref<32x128xf32, #tpu.memory_space<vmem>>, vector<32x128xf32>
    %c0_5 = arith.constant 0 : index
    %c0_6 = arith.constant 0 : index
    %9 = vector.load %arg3[%c0_5, %c0_6] : memref<1x128xf32, #tpu.memory_space<vmem>>, vector<1x128xf32>
    %cst = arith.constant dense<0.000000e+00> : vector<64x128xf32>
    %10 = tpu.matmul %6, %7, %cst {dimension_numbers = #tpu.dot_dimension_numbers<[1], [0], [0], [1], [0, 0, 1, 1], [], []>} : vector<64x4xf32>, vector<4x128xf32>, vector<64x128xf32> -> vector<64x128xf32>
    %11 = vector.broadcast %9 : vector<1x128xf32> to vector<64x128xf32>
    %12 = arith.addf %10, %11 : vector<64x128xf32>
    %cst_7 = arith.constant 0.000000e+00 : f32
    %13 = vector.broadcast %cst_7 : f32 to vector<8x32xf32>
    %cst_8 = arith.constant 0.000000e+00 : f32
    %14 = vector.broadcast %cst_8 : f32 to vector<8x32xf32>
    %15 = vector.extract_strided_slice %12 {offsets = [0, 0], sizes = [8, 128], strides = [1, 1]} : vector<64x128xf32> to vector<8x128xf32>
    %cst_9 = arith.constant dense<0.000000e+00> : vector<8x128xf32>
    %16 = tpu.matmul %13, %8, %cst_9 {dimension_numbers = #tpu.dot_dimension_numbers<[1], [0], [0], [1], [0, 0, 1, 1], [], []>} : vector<8x32xf32>, vector<32x128xf32>, vector<8x128xf32> -> vector<8x128xf32>
    %17 = arith.addf %15, %16 : vector<8x128xf32>
    %18 = math.tanh %17 : vector<8x128xf32>
    %19 = arith.negf %17 : vector<8x128xf32>
    %20 = math.exp %19 : vector<8x128xf32>
    %cst_10 = arith.constant 1.000000e+00 : f32
    %21 = vector.broadcast %cst_10 : f32 to vector<8x128xf32>
    %22 = arith.addf %21, %20 : vector<8x128xf32>
    %23 = arith.divf %21, %22 : vector<8x128xf32>
    %24 = arith.select %5, %18, %23 : vector<8x128xi1>, vector<8x128xf32>
    %25 = vector.extract_strided_slice %24 {offsets = [0, 0], sizes = [8, 32], strides = [1, 1]} : vector<8x128xf32> to vector<8x32xf32>
    %26 = vector.extract_strided_slice %24 {offsets = [0, 32], sizes = [8, 32], strides = [1, 1]} : vector<8x128xf32> to vector<8x32xf32>
    %27 = vector.extract_strided_slice %24 {offsets = [0, 64], sizes = [8, 32], strides = [1, 1]} : vector<8x128xf32> to vector<8x32xf32>
    %28 = vector.extract_strided_slice %24 {offsets = [0, 96], sizes = [8, 32], strides = [1, 1]} : vector<8x128xf32> to vector<8x32xf32>
    %29 = arith.mulf %26, %14 : vector<8x32xf32>
    %30 = arith.mulf %25, %27 : vector<8x32xf32>
    %31 = arith.addf %29, %30 : vector<8x32xf32>
    %32 = math.tanh %31 : vector<8x32xf32>
    %33 = arith.mulf %28, %32 : vector<8x32xf32>
    %34 = vector.extract_strided_slice %12 {offsets = [8, 0], sizes = [8, 128], strides = [1, 1]} : vector<64x128xf32> to vector<8x128xf32>
    %cst_11 = arith.constant dense<0.000000e+00> : vector<8x128xf32>
    %35 = tpu.matmul %33, %8, %cst_11 {dimension_numbers = #tpu.dot_dimension_numbers<[1], [0], [0], [1], [0, 0, 1, 1], [], []>} : vector<8x32xf32>, vector<32x128xf32>, vector<8x128xf32> -> vector<8x128xf32>
    %36 = arith.addf %34, %35 : vector<8x128xf32>
    %37 = math.tanh %36 : vector<8x128xf32>
    %38 = arith.negf %36 : vector<8x128xf32>
    %39 = math.exp %38 : vector<8x128xf32>
    %cst_12 = arith.constant 1.000000e+00 : f32
    %40 = vector.broadcast %cst_12 : f32 to vector<8x128xf32>
    %41 = arith.addf %40, %39 : vector<8x128xf32>
    %42 = arith.divf %40, %41 : vector<8x128xf32>
    %43 = arith.select %5, %37, %42 : vector<8x128xi1>, vector<8x128xf32>
    %44 = vector.extract_strided_slice %43 {offsets = [0, 0], sizes = [8, 32], strides = [1, 1]} : vector<8x128xf32> to vector<8x32xf32>
    %45 = vector.extract_strided_slice %43 {offsets = [0, 32], sizes = [8, 32], strides = [1, 1]} : vector<8x128xf32> to vector<8x32xf32>
    %46 = vector.extract_strided_slice %43 {offsets = [0, 64], sizes = [8, 32], strides = [1, 1]} : vector<8x128xf32> to vector<8x32xf32>
    %47 = vector.extract_strided_slice %43 {offsets = [0, 96], sizes = [8, 32], strides = [1, 1]} : vector<8x128xf32> to vector<8x32xf32>
    %48 = arith.mulf %45, %31 : vector<8x32xf32>
    %49 = arith.mulf %44, %46 : vector<8x32xf32>
    %50 = arith.addf %48, %49 : vector<8x32xf32>
    %51 = math.tanh %50 : vector<8x32xf32>
    %52 = arith.mulf %47, %51 : vector<8x32xf32>
    %53 = vector.extract_strided_slice %12 {offsets = [16, 0], sizes = [8, 128], strides = [1, 1]} : vector<64x128xf32> to vector<8x128xf32>
    %cst_13 = arith.constant dense<0.000000e+00> : vector<8x128xf32>
    %54 = tpu.matmul %52, %8, %cst_13 {dimension_numbers = #tpu.dot_dimension_numbers<[1], [0], [0], [1], [0, 0, 1, 1], [], []>} : vector<8x32xf32>, vector<32x128xf32>, vector<8x128xf32> -> vector<8x128xf32>
    %55 = arith.addf %53, %54 : vector<8x128xf32>
    %56 = math.tanh %55 : vector<8x128xf32>
    %57 = arith.negf %55 : vector<8x128xf32>
    %58 = math.exp %57 : vector<8x128xf32>
    %cst_14 = arith.constant 1.000000e+00 : f32
    %59 = vector.broadcast %cst_14 : f32 to vector<8x128xf32>
    %60 = arith.addf %59, %58 : vector<8x128xf32>
    %61 = arith.divf %59, %60 : vector<8x128xf32>
    %62 = arith.select %5, %56, %61 : vector<8x128xi1>, vector<8x128xf32>
    %63 = vector.extract_strided_slice %62 {offsets = [0, 0], sizes = [8, 32], strides = [1, 1]} : vector<8x128xf32> to vector<8x32xf32>
    %64 = vector.extract_strided_slice %62 {offsets = [0, 32], sizes = [8, 32], strides = [1, 1]} : vector<8x128xf32> to vector<8x32xf32>
    %65 = vector.extract_strided_slice %62 {offsets = [0, 64], sizes = [8, 32], strides = [1, 1]} : vector<8x128xf32> to vector<8x32xf32>
    %66 = vector.extract_strided_slice %62 {offsets = [0, 96], sizes = [8, 32], strides = [1, 1]} : vector<8x128xf32> to vector<8x32xf32>
    %67 = arith.mulf %64, %50 : vector<8x32xf32>
    %68 = arith.mulf %63, %65 : vector<8x32xf32>
    %69 = arith.addf %67, %68 : vector<8x32xf32>
    %70 = math.tanh %69 : vector<8x32xf32>
    %71 = arith.mulf %66, %70 : vector<8x32xf32>
    %72 = vector.extract_strided_slice %12 {offsets = [24, 0], sizes = [8, 128], strides = [1, 1]} : vector<64x128xf32> to vector<8x128xf32>
    %cst_15 = arith.constant dense<0.000000e+00> : vector<8x128xf32>
    %73 = tpu.matmul %71, %8, %cst_15 {dimension_numbers = #tpu.dot_dimension_numbers<[1], [0], [0], [1], [0, 0, 1, 1], [], []>} : vector<8x32xf32>, vector<32x128xf32>, vector<8x128xf32> -> vector<8x128xf32>
    %74 = arith.addf %72, %73 : vector<8x128xf32>
    %75 = math.tanh %74 : vector<8x128xf32>
    %76 = arith.negf %74 : vector<8x128xf32>
    %77 = math.exp %76 : vector<8x128xf32>
    %cst_16 = arith.constant 1.000000e+00 : f32
    %78 = vector.broadcast %cst_16 : f32 to vector<8x128xf32>
    %79 = arith.addf %78, %77 : vector<8x128xf32>
    %80 = arith.divf %78, %79 : vector<8x128xf32>
    %81 = arith.select %5, %75, %80 : vector<8x128xi1>, vector<8x128xf32>
    %82 = vector.extract_strided_slice %81 {offsets = [0, 0], sizes = [8, 32], strides = [1, 1]} : vector<8x128xf32> to vector<8x32xf32>
    %83 = vector.extract_strided_slice %81 {offsets = [0, 32], sizes = [8, 32], strides = [1, 1]} : vector<8x128xf32> to vector<8x32xf32>
    %84 = vector.extract_strided_slice %81 {offsets = [0, 64], sizes = [8, 32], strides = [1, 1]} : vector<8x128xf32> to vector<8x32xf32>
    %85 = vector.extract_strided_slice %81 {offsets = [0, 96], sizes = [8, 32], strides = [1, 1]} : vector<8x128xf32> to vector<8x32xf32>
    %86 = arith.mulf %83, %69 : vector<8x32xf32>
    %87 = arith.mulf %82, %84 : vector<8x32xf32>
    %88 = arith.addf %86, %87 : vector<8x32xf32>
    %89 = math.tanh %88 : vector<8x32xf32>
    %90 = arith.mulf %85, %89 : vector<8x32xf32>
    %91 = vector.extract_strided_slice %12 {offsets = [32, 0], sizes = [8, 128], strides = [1, 1]} : vector<64x128xf32> to vector<8x128xf32>
    %cst_17 = arith.constant dense<0.000000e+00> : vector<8x128xf32>
    %92 = tpu.matmul %90, %8, %cst_17 {dimension_numbers = #tpu.dot_dimension_numbers<[1], [0], [0], [1], [0, 0, 1, 1], [], []>} : vector<8x32xf32>, vector<32x128xf32>, vector<8x128xf32> -> vector<8x128xf32>
    %93 = arith.addf %91, %92 : vector<8x128xf32>
    %94 = math.tanh %93 : vector<8x128xf32>
    %95 = arith.negf %93 : vector<8x128xf32>
    %96 = math.exp %95 : vector<8x128xf32>
    %cst_18 = arith.constant 1.000000e+00 : f32
    %97 = vector.broadcast %cst_18 : f32 to vector<8x128xf32>
    %98 = arith.addf %97, %96 : vector<8x128xf32>
    %99 = arith.divf %97, %98 : vector<8x128xf32>
    %100 = arith.select %5, %94, %99 : vector<8x128xi1>, vector<8x128xf32>
    %101 = vector.extract_strided_slice %100 {offsets = [0, 0], sizes = [8, 32], strides = [1, 1]} : vector<8x128xf32> to vector<8x32xf32>
    %102 = vector.extract_strided_slice %100 {offsets = [0, 32], sizes = [8, 32], strides = [1, 1]} : vector<8x128xf32> to vector<8x32xf32>
    %103 = vector.extract_strided_slice %100 {offsets = [0, 64], sizes = [8, 32], strides = [1, 1]} : vector<8x128xf32> to vector<8x32xf32>
    %104 = vector.extract_strided_slice %100 {offsets = [0, 96], sizes = [8, 32], strides = [1, 1]} : vector<8x128xf32> to vector<8x32xf32>
    %105 = arith.mulf %102, %88 : vector<8x32xf32>
    %106 = arith.mulf %101, %103 : vector<8x32xf32>
    %107 = arith.addf %105, %106 : vector<8x32xf32>
    %108 = math.tanh %107 : vector<8x32xf32>
    %109 = arith.mulf %104, %108 : vector<8x32xf32>
    %110 = vector.extract_strided_slice %12 {offsets = [40, 0], sizes = [8, 128], strides = [1, 1]} : vector<64x128xf32> to vector<8x128xf32>
    %cst_19 = arith.constant dense<0.000000e+00> : vector<8x128xf32>
    %111 = tpu.matmul %109, %8, %cst_19 {dimension_numbers = #tpu.dot_dimension_numbers<[1], [0], [0], [1], [0, 0, 1, 1], [], []>} : vector<8x32xf32>, vector<32x128xf32>, vector<8x128xf32> -> vector<8x128xf32>
    %112 = arith.addf %110, %111 : vector<8x128xf32>
    %113 = math.tanh %112 : vector<8x128xf32>
    %114 = arith.negf %112 : vector<8x128xf32>
    %115 = math.exp %114 : vector<8x128xf32>
    %cst_20 = arith.constant 1.000000e+00 : f32
    %116 = vector.broadcast %cst_20 : f32 to vector<8x128xf32>
    %117 = arith.addf %116, %115 : vector<8x128xf32>
    %118 = arith.divf %116, %117 : vector<8x128xf32>
    %119 = arith.select %5, %113, %118 : vector<8x128xi1>, vector<8x128xf32>
    %120 = vector.extract_strided_slice %119 {offsets = [0, 0], sizes = [8, 32], strides = [1, 1]} : vector<8x128xf32> to vector<8x32xf32>
    %121 = vector.extract_strided_slice %119 {offsets = [0, 32], sizes = [8, 32], strides = [1, 1]} : vector<8x128xf32> to vector<8x32xf32>
    %122 = vector.extract_strided_slice %119 {offsets = [0, 64], sizes = [8, 32], strides = [1, 1]} : vector<8x128xf32> to vector<8x32xf32>
    %123 = vector.extract_strided_slice %119 {offsets = [0, 96], sizes = [8, 32], strides = [1, 1]} : vector<8x128xf32> to vector<8x32xf32>
    %124 = arith.mulf %121, %107 : vector<8x32xf32>
    %125 = arith.mulf %120, %122 : vector<8x32xf32>
    %126 = arith.addf %124, %125 : vector<8x32xf32>
    %127 = math.tanh %126 : vector<8x32xf32>
    %128 = arith.mulf %123, %127 : vector<8x32xf32>
    %129 = vector.extract_strided_slice %12 {offsets = [48, 0], sizes = [8, 128], strides = [1, 1]} : vector<64x128xf32> to vector<8x128xf32>
    %cst_21 = arith.constant dense<0.000000e+00> : vector<8x128xf32>
    %130 = tpu.matmul %128, %8, %cst_21 {dimension_numbers = #tpu.dot_dimension_numbers<[1], [0], [0], [1], [0, 0, 1, 1], [], []>} : vector<8x32xf32>, vector<32x128xf32>, vector<8x128xf32> -> vector<8x128xf32>
    %131 = arith.addf %129, %130 : vector<8x128xf32>
    %132 = math.tanh %131 : vector<8x128xf32>
    %133 = arith.negf %131 : vector<8x128xf32>
    %134 = math.exp %133 : vector<8x128xf32>
    %cst_22 = arith.constant 1.000000e+00 : f32
    %135 = vector.broadcast %cst_22 : f32 to vector<8x128xf32>
    %136 = arith.addf %135, %134 : vector<8x128xf32>
    %137 = arith.divf %135, %136 : vector<8x128xf32>
    %138 = arith.select %5, %132, %137 : vector<8x128xi1>, vector<8x128xf32>
    %139 = vector.extract_strided_slice %138 {offsets = [0, 0], sizes = [8, 32], strides = [1, 1]} : vector<8x128xf32> to vector<8x32xf32>
    %140 = vector.extract_strided_slice %138 {offsets = [0, 32], sizes = [8, 32], strides = [1, 1]} : vector<8x128xf32> to vector<8x32xf32>
    %141 = vector.extract_strided_slice %138 {offsets = [0, 64], sizes = [8, 32], strides = [1, 1]} : vector<8x128xf32> to vector<8x32xf32>
    %142 = vector.extract_strided_slice %138 {offsets = [0, 96], sizes = [8, 32], strides = [1, 1]} : vector<8x128xf32> to vector<8x32xf32>
    %143 = arith.mulf %140, %126 : vector<8x32xf32>
    %144 = arith.mulf %139, %141 : vector<8x32xf32>
    %145 = arith.addf %143, %144 : vector<8x32xf32>
    %146 = math.tanh %145 : vector<8x32xf32>
    %147 = arith.mulf %142, %146 : vector<8x32xf32>
    %148 = vector.extract_strided_slice %12 {offsets = [56, 0], sizes = [8, 128], strides = [1, 1]} : vector<64x128xf32> to vector<8x128xf32>
    %cst_23 = arith.constant dense<0.000000e+00> : vector<8x128xf32>
    %149 = tpu.matmul %147, %8, %cst_23 {dimension_numbers = #tpu.dot_dimension_numbers<[1], [0], [0], [1], [0, 0, 1, 1], [], []>} : vector<8x32xf32>, vector<32x128xf32>, vector<8x128xf32> -> vector<8x128xf32>
    %150 = arith.addf %148, %149 : vector<8x128xf32>
    %151 = math.tanh %150 : vector<8x128xf32>
    %152 = arith.negf %150 : vector<8x128xf32>
    %153 = math.exp %152 : vector<8x128xf32>
    %cst_24 = arith.constant 1.000000e+00 : f32
    %154 = vector.broadcast %cst_24 : f32 to vector<8x128xf32>
    %155 = arith.addf %154, %153 : vector<8x128xf32>
    %156 = arith.divf %154, %155 : vector<8x128xf32>
    %157 = arith.select %5, %151, %156 : vector<8x128xi1>, vector<8x128xf32>
    %158 = vector.extract_strided_slice %157 {offsets = [0, 0], sizes = [8, 32], strides = [1, 1]} : vector<8x128xf32> to vector<8x32xf32>
    %159 = vector.extract_strided_slice %157 {offsets = [0, 32], sizes = [8, 32], strides = [1, 1]} : vector<8x128xf32> to vector<8x32xf32>
    %160 = vector.extract_strided_slice %157 {offsets = [0, 64], sizes = [8, 32], strides = [1, 1]} : vector<8x128xf32> to vector<8x32xf32>
    %161 = vector.extract_strided_slice %157 {offsets = [0, 96], sizes = [8, 32], strides = [1, 1]} : vector<8x128xf32> to vector<8x32xf32>
    %162 = arith.mulf %159, %145 : vector<8x32xf32>
    %163 = arith.mulf %158, %160 : vector<8x32xf32>
    %164 = arith.addf %162, %163 : vector<8x32xf32>
    %165 = math.tanh %164 : vector<8x32xf32>
    %166 = arith.mulf %161, %165 : vector<8x32xf32>
    %c0_25 = arith.constant 0 : index
    %c0_26 = arith.constant 0 : index
    %167 = vector.load %arg4[%c0_25, %c0_26] : memref<32x128xf32, #tpu.memory_space<vmem>>, vector<32x128xf32>
    %c0_27 = arith.constant 0 : index
    %c0_28 = arith.constant 0 : index
    %168 = vector.load %arg6[%c0_27, %c0_28] : memref<128x128xf32, #tpu.memory_space<vmem>>, vector<128x128xf32>
    %cst_29 = arith.constant 0.000000e+00 : f32
    %169 = vector.broadcast %cst_29 : f32 to vector<8x32xf32>
    %170 = arith.maximumf %166, %169 : vector<8x32xf32>
    %cst_30 = arith.constant dense<0.000000e+00> : vector<8x128xf32>
    %171 = tpu.matmul %170, %167, %cst_30 {dimension_numbers = #tpu.dot_dimension_numbers<[1], [0], [0], [1], [0, 0, 1, 1], [], []>} : vector<8x32xf32>, vector<32x128xf32>, vector<8x128xf32> -> vector<8x128xf32>
    %c0_31 = arith.constant 0 : index
    %c0_32 = arith.constant 0 : index
    %172 = vector.load %arg5[%c0_31, %c0_32] : memref<1x128xf32, #tpu.memory_space<vmem>>, vector<1x128xf32>
    %173 = vector.broadcast %172 : vector<1x128xf32> to vector<8x128xf32>
    %174 = arith.addf %171, %173 : vector<8x128xf32>
    %cst_33 = arith.constant 0.000000e+00 : f32
    %175 = vector.broadcast %cst_33 : f32 to vector<8x128xf32>
    %176 = arith.maximumf %174, %175 : vector<8x128xf32>
    %cst_34 = arith.constant dense<0.000000e+00> : vector<8x128xf32>
    %177 = tpu.matmul %176, %168, %cst_34 {dimension_numbers = #tpu.dot_dimension_numbers<[1], [0], [0], [1], [0, 0, 1, 1], [], []>} : vector<8x128xf32>, vector<128x128xf32>, vector<8x128xf32> -> vector<8x128xf32>
    %c0_35 = arith.constant 0 : index
    %c0_36 = arith.constant 0 : index
    %178 = vector.load %arg7[%c0_35, %c0_36] : memref<1x128xf32, #tpu.memory_space<vmem>>, vector<1x128xf32>
    %179 = vector.broadcast %178 : vector<1x128xf32> to vector<8x128xf32>
    %180 = arith.addf %177, %179 : vector<8x128xf32>
    %c0_37 = arith.constant 0 : index
    %c0_38 = arith.constant 0 : index
    %181 = vector.load %arg8[%c0_37, %c0_38] : memref<8x128xf32, #tpu.memory_space<vmem>>, vector<8x128xf32>
    tpu.vector_store %arg8[%c0_37, %c0_38], %180 {strides = array<i32>} : memref<8x128xf32, #tpu.memory_space<vmem>>, vector<8x128xf32>,
    return
  }
}

</mosaic_0001>

<bundles_post_ra>
// kernel: forward.1
= control target key start
LH: loop header
LB: loop body
LE: loop exit
PB: predicated region body
PF: predicated region fallthrough
CT: control target
= control target key end

     0   :  { %13 = vsyncpa [#allocation3], 0  ;;  %s1919_s0 = inlined_call_operand.vmem [shape: f32[64,4], index: 0, kind: input, shape index: {}]   ;;  %s1920_s1 = inlined_call_operand.vmem [shape: f32[4,128], index: 1, kind: input, shape index: {}]   ;;  %s1921_s2 = inlined_call_operand.hbm [shape: f32[32,128], index: 2, kind: input, shape index: {}]   ;;  %s1922_s3 = inlined_call_operand.vmem [shape: f32[1,128], index: 3, kind: input, shape index: {}]   ;;  %s1923_s4 = inlined_call_operand.hbm [shape: f32[32,128], index: 4, kind: input, shape index: {}]   ;;  %s1924_s5 = inlined_call_operand.vmem [shape: f32[1,128], index: 5, kind: input, shape index: {}]   ;;  %s1925_s6 = inlined_call_operand.vmem [shape: f32[128,128], index: 6, kind: input, shape index: {}]   ;;  %s1926_s7 = inlined_call_operand.vmem [shape: f32[1,128], index: 7, kind: input, shape index: {}]   ;;  %s1927_s8 = inlined_call_operand.vmem [shape: f32[8,128], index: 8, kind: output, shape index: {}]  }
   0x1   :  { %14 = vsyncpa [#allocation5], 0  ;;  %s1574_s27 = smov [#allocation2]  }
   0x2   :  { %s24_s28 = sshll.u32 %s1574_s27, 4  ;;  %s25_s28 = int_to_ptr.vmem [resolvable:$true] %s24_s28 }
   0x3   :  { %s1538_s29 = scalar_lea.vmem %s25_s28, 512  ;;  %p1543_p1 = scmp.lt.s32.totalorder %s25_s28, %s25_s28 }
   0x4   :  { %p1539_p0 = scmp.ne.s32.totalorder %s25_s28, %s1538_s29  ;;  %p1544_p2 = scmp.lt.s32.totalorder %s1538_s29, %s1538_s29 }
   0x6   :  { %p1545_p3 = por %p1544_p2, %p1543_p1 }
   0x8   :  { %p1546_p4 = pnand %p1545_p3, %p1539_p0 }
   0xa   :  { %1549 = shalt.err (!%p1546_p4)
}
   0xb   :  { %s1575_s30 = smov 128   ;;  %s1576_s9 = smov 8  }
   0xc   :  { %30 = dma.hbm_to_vmem [thread:$0]  %s1921_s2, 512, %s25_s28, [#allocation3], %s1575_s30, %s1575_s30, %s1576_s9  }
   0xd   :  { %s1577_s12 = smov [#allocation4]  }
   0xe   :  { %s38_s13 = sshll.u32 %s1577_s12, 4  ;;  %s39_s13 = int_to_ptr.vmem [resolvable:$true] %s38_s13 }
   0xf   :  { %s1558_s14 = scalar_lea.vmem %s39_s13, 512  ;;  %p1563_p6 = scmp.lt.s32.totalorder %s39_s13, %s39_s13 }
  0x10   :  { %p1559_p5 = scmp.ne.s32.totalorder %s39_s13, %s1558_s14  ;;  %p1564_p7 = scmp.lt.s32.totalorder %s1558_s14, %s1558_s14 }
  0x12   :  { %p1565_p8 = por %p1564_p7, %p1563_p6 }
  0x14   :  { %p1566_p9 = pnand %p1565_p8, %p1559_p5 }
  0x16   :  { %1569 = shalt.err (!%p1566_p9)
}
  0x17   :  { %44 = dma.hbm_to_vmem [thread:$0]  %s1923_s4, 512, %s39_s13, [#allocation5], %s1575_s30, %s1575_s30, %s1576_s9  }
  0x18   :  { %1570 = dma.done.wait [#allocation3], 512  }
  0x19   :  { %1571 = vsyncadd [#allocation3], 4294966784 }
  0x1a   :  { %1572 = dma.done.wait [#allocation5], 512  }
  0x1b   :  { %1573 = vsyncadd [#allocation5], 4294966784  ;;  %v1578_v0 = vmov 0.0   ;;  %vm1579_vm0 = vmmov 0   ;;  %vm107_vm1 = vcmask 1043456   ;;  %vm82_vm2 = vcmask 31744  }
  0x1c   :  { %1357 = vmatprep.subr.mxu1 %v1578_v0  ;;  %1365 = vmatprep.mubr.msk.f32.mxu1 %vm1579_vm0, %v1578_v0  ;;  %v70_v1 = vld [vmem:[%s1920_s1] sm:$0xf]  ;;  %v63_v3 = vld [vmem:[%s1919_s0 + $0x8] sm:$0xff]  ;;  %v1646_v4 = vld [vmem:[#allocation2 + $0x18] sm:$0xff]  ;;  %v57_v37 = vlaneseq  ;;  %s1581_s11 = smov 32   ;;  %vm216_vm6 = vcmask 261120  }
  0x1d   :  { %v62_v2 = vld [vmem:[%s1919_s0] sm:$0xff]  ;;  %1310 = vmatprep.subr.msk.mxu0 %vm107_vm1, %v70_v1  ;;  %v64_v5 = vld [vmem:[%s1919_s0 + $0x10] sm:$0xff]  ;;  %1358 = vmatpush3.msra.mxu1 %v1646_v4  ;;  %v65_v7 = vld [vmem:[%s1919_s0 + $0x18] sm:$0xff] }
  0x1e   :  { %1312 = vmatprep.mubr.msk.f32.mxu0 %vm82_vm2, %v62_v2  ;;  %1311 = vmatpush3.msk.msra.mxu0 %vm107_vm1, %v70_v1  ;;  %v1654_v6 = vld [vmem:[#allocation2 + $0x10] sm:$0xff]  ;;  %v66_v8 = vld [vmem:[%s1919_s0 + $0x20] sm:$0xff]  ;;  %v1665_v9 = vld [vmem:[#allocation2 + $0x8] sm:$0xff]  ;;  %v58_v38 = vand.u32 127, %v57_v37 }
  0x1f   :  { %1313 = vmatmul.mubr.msk.f32.vlgmr.msra.gmra.mxu0 %vm82_vm2, %v63_v3  ;;  %1324 = vmatprep.subr.mxu0 %v1578_v0  ;;  %v1672_v10 = vld [vmem:[#allocation2] sm:$0xff]  ;;  %v67_v11 = vld [vmem:[%s1919_s0 + $0x28] sm:$0xff]  ;;  %v68_v12 = vld [vmem:[%s1919_s0 + $0x30] sm:$0xff] }
  0x20   :  { %1325 = vmatpush3.msra.mxu0 %v1646_v4  ;;  %1315 = vmatprep.mubr.msk.f32.mxu0 %vm82_vm2, %v64_v5  ;;  %v69_v13 = vld [vmem:[%s1919_s0 + $0x38] sm:$0xff]  ;;  %v1211_v14 = vld [vmem:[%s1922_s3] ss:$0 sm:$0xff]  ;;  %vm59_vm3 = vcmp.ge.s32.totalorder %v58_v38, 64  ;;  %vm60_vm4 = vcmp.lt.s32.totalorder %v58_v38, 96  ;;  %s1580_s3 = smov 64  }
  0x21   :  { %1326 = vmatprep.subr.mxu0 %v1578_v0  ;;  %1359 = vmatprep.subr.mxu1 %v1578_v0  ;;  %vm1724_vm5 = vmand %vm59_vm3, %vm60_vm4  ;;  %v1023_v39 = vld [vmem:[#allocation4] sm:$0xff] }
  0x22   :  { %1327 = vmatpush3.msra.mxu0 %v1654_v6  ;;  %1360 = vmatpush3.msra.mxu1 %v1654_v6 }
  0x23   :  { %1316 = vmatmul.mubr.msk.f32.gmra.mxu0 %vm82_vm2, %v65_v7  ;;  %1328 = vmatprep.subr.mxu0 %v1578_v0 }
  0x24   :  { %1318 = vmatprep.mubr.msk.f32.mxu0 %vm82_vm2, %v66_v8  ;;  %1329 = vmatpush3.msra.mxu0 %v1665_v9 }
  0x25   :  { %1330 = vmatprep.subr.mxu0 %v1578_v0  ;;  %1361 = vmatprep.subr.mxu1 %v1578_v0 }
  0x26   :  { %1331 = vmatpush3.msra.mxu0 %v1672_v10  ;;  %1362 = vmatpush3.msra.mxu1 %v1665_v9 }
  0x27   :  { %1319 = vmatmul.mubr.msk.f32.gmra.mxu0 %vm82_vm2, %v67_v11  ;;  %1335 = vmatprep.subr.mxu0 %v1578_v0 }
  0x28   :  { %1321 = vmatprep.mubr.msk.f32.mxu0 %vm82_vm2, %v68_v12  ;;  %1363 = vmatprep.subr.mxu1 %v1578_v0 }
  0x29   :  { %1364 = vmatpush3.msra.mxu1 %v1672_v10 }
  0x2a   :  { %1379 = vmatprep.subr.mxu1 %v1578_v0 }
  0x2b   :  { %1322 = vmatmul.mubr.msk.f32.gmra.mxu0 %vm82_vm2, %v69_v13 }
  0x2c   :  { %1332 = vmatprep.mubr.msk.f32.mxu0 %vm1579_vm0, %v1578_v0 }
  0x2f   :  { %1333 = vmatmul.mubr.f32.vlgmr.msra.gmra.mxu0 %v1578_v0 }
  0x30   :  { %1336 = vmatpush3.msra.mxu0 %v1646_v4  ;;  %1343 = vmatprep.mubr.msk.f32.mxu0 %vm1579_vm0, %v1578_v0 }
  0x31   :  { %1337 = vmatprep.subr.mxu0 %v1578_v0 }
  0x32   :  { %1338 = vmatpush3.msra.mxu0 %v1654_v6 }
  0x33   :  { %1339 = vmatprep.subr.mxu0 %v1578_v0 }
  0x34   :  { %1340 = vmatpush3.msra.mxu0 %v1665_v9 }
  0x35   :  { %1341 = vmatprep.subr.mxu0 %v1578_v0 }
  0x36   :  { %1342 = vmatpush3.msra.mxu0 %v1672_v10 }
  0x37   :  { %1346 = vmatprep.subr.mxu0 %v1578_v0 }
  0xdf   :  { %v1314_v15 = vpop.f32.mrf.mxu0 }
  0xe0   :  { %v183_v16 = vadd.f32 %v1314_v15, %v1211_v14 }
  0xe1   :  { %v177_v17 = vpop.f32.mrf.mxu0 }
  0xe2   :  { %v178_v29 = vadd.f32 %v1211_v14, %v177_v17 }
  0xe3   :  { %v1317_v18 = vpop.f32.mrf.mxu0 }
  0xe4   :  { %v1712_v19 = vadd.f32 %v1317_v18, %v1211_v14 }
  0xe5   :  { %v187_v20 = vpop.f32.mrf.mxu0 }
  0xe6   :  { %v1714_v21 = vadd.f32 %v1211_v14, %v187_v20 }
  0xe7   :  { %v1320_v22 = vpop.f32.mrf.mxu0 }
  0xe8   :  { %v1716_v23 = vadd.f32 %v1320_v22, %v1211_v14 }
  0xe9   :  { %v197_v24 = vpop.f32.mrf.mxu0 }
  0xea   :  { %v1718_v25 = vadd.f32 %v1211_v14, %v197_v24 }
  0xeb   :  { %v1323_v26 = vpop.f32.mrf.mxu0 }
  0xec   :  { %v1720_v27 = vadd.f32 %v1323_v26, %v1211_v14 }
  0xed   :  { %v207_v28 = vpop.f32.mrf.mxu0 }
  0xee   :  { %v1722_v30 = vadd.f32 %v1211_v14, %v207_v28 }
  0xef   :  { %v286_v31 = vpop.f32.mrf.mxu0 }
  0xf0   :  { %v290_v32 = vadd.f32 %v286_v31, %v178_v29 }
  0xf1   :  { %v1334_v33 = vpop.f32.mrf.mxu0 }
  0xf2   :  { %v1221_v34 = vmul.f32 -1.442695, %v290_v32 }
  0xf4   :  { %1466 = vpow2.f32 %v1221_v34 }
  0xf5   :  { %1468 = vtanh.f32 %v290_v32 }
 0x101   :  { %v1467_v35 = vpop.eup %1466 }
 0x102   :  { %v295_v36 = vadd.f32 1.0, %v1467_v35  ;;  %v1469_v40 = vpop.eup %1468 }
 0x104   :  { %1470 = vrcp.f32 %v295_v36 }
 0x111   :  { %v1471_v41 = vpop.eup %1470 }
 0x112   :  { %v298_v42 = vsel %vm1724_vm5, %v1469_v40, %v1471_v41 }
 0x113   :  { %301 = vrot.lane.b32.xlu0 %v298_v42, %s1580_s3  ;;  %v299_v45 = vmul.f32 0.0, %v298_v42 }
 0x185   :  { %v302_v43 = vpop.permute.xlu0 %301 }
 0x186   :  { %v304_v44 = vmul.f32 %v302_v43, %v298_v42 }
 0x188   :  { %306 = vrot.lane.b32.xlu0 %v304_v44, %s1581_s11 }
 0x1fa   :  { %v307_v46 = vpop.permute.xlu0 %306 }
 0x1fb   :  { %v309_v47 = vadd.f32 %v307_v46, %v299_v45 }
 0x1fd   :  { %1472 = vtanh.f32 %v309_v47 }
 0x20a   :  { %v1473_v48 = vpop.eup %1472 }
 0x20b   :  { %312 = vrot.lane.b32.xlu1 %v1473_v48, %s1580_s3 }
 0x27d   :  { %v313_v49 = vpop.permute.xlu1 %312 }
 0x27e   :  { %v315_v50 = vmul.f32 %v313_v49, %v298_v42 }
 0x280   :  { %317 = vrot.lane.b32.xlu1 %v315_v50, %s1581_s11 }
 0x2f2   :  { %v318_v51 = vpop.permute.xlu1 %317 }
 0x2f3   :  { %1344 = vmatmul.mubr.msk.f32.vlgmr.msra.gmra.mxu0 %vm216_vm6, %v318_v51 }
 0x2f4   :  { %1347 = vmatpush3.msra.mxu0 %v1646_v4  ;;  %1354 = vmatprep.mubr.msk.f32.mxu0 %vm1579_vm0, %v1578_v0 }
 0x2f5   :  { %1348 = vmatprep.subr.mxu0 %v1578_v0 }
 0x2f6   :  { %1349 = vmatpush3.msra.mxu0 %v1654_v6 }
 0x2f7   :  { %1350 = vmatprep.subr.mxu0 %v1578_v0 }
 0x2f8   :  { %1351 = vmatpush3.msra.mxu0 %v1665_v9 }
 0x2f9   :  { %1352 = vmatprep.subr.mxu0 %v1578_v0 }
 0x2fa   :  { %1353 = vmatpush3.msra.mxu0 %v1672_v10 }
 0x2fb   :  { %1368 = vmatprep.subr.mxu0 %v1578_v0 }
 0x3b3   :  { %v387_v52 = vpop.f32.mrf.mxu0 }
 0x3b4   :  { %v391_v53 = vadd.f32 %v387_v52, %v183_v16 }
 0x3b5   :  { %v1345_v54 = vpop.f32.mrf.mxu0 }
 0x3b6   :  { %v1223_v55 = vmul.f32 -1.442695, %v391_v53 }
 0x3b8   :  { %1474 = vpow2.f32 %v1223_v55 }
 0x3b9   :  { %1476 = vtanh.f32 %v391_v53 }
 0x3c5   :  { %v1475_v56 = vpop.eup %1474 }
 0x3c6   :  { %v396_v57 = vadd.f32 1.0, %v1475_v56  ;;  %v1477_v58 = vpop.eup %1476 }
 0x3c8   :  { %1478 = vrcp.f32 %v396_v57 }
 0x3d5   :  { %v1479_v59 = vpop.eup %1478 }
 0x3d6   :  { %v399_v60 = vsel %vm1724_vm5, %v1477_v58, %v1479_v59 }
 0x3d7   :  { %402 = vrot.lane.b32.xlu0 %v399_v60, %s1580_s3  ;;  %v400_v63 = vmul.f32 %v399_v60, %v309_v47 }
 0x449   :  { %v403_v61 = vpop.permute.xlu0 %402 }
 0x44a   :  { %v405_v62 = vmul.f32 %v403_v61, %v399_v60 }
 0x44c   :  { %407 = vrot.lane.b32.xlu1 %v405_v62, %s1581_s11 }
 0x4be   :  { %v408_v1 = vpop.permute.xlu1 %407 }
 0x4bf   :  { %v410_v2 = vadd.f32 %v408_v1, %v400_v63 }
 0x4c1   :  { %1480 = vtanh.f32 %v410_v2 }
 0x4ce   :  { %v1481_v3 = vpop.eup %1480 }
 0x4cf   :  { %413 = vrot.lane.b32.xlu0 %v1481_v3, %s1580_s3 }
 0x541   :  { %v414_v5 = vpop.permute.xlu0 %413 }
 0x542   :  { %v416_v7 = vmul.f32 %v414_v5, %v399_v60 }
 0x544   :  { %418 = vrot.lane.b32.xlu1 %v416_v7, %s1581_s11 }
 0x5b6   :  { %v419_v8 = vpop.permute.xlu1 %418 }
 0x5b7   :  { %1355 = vmatmul.mubr.msk.f32.vlgmr.msra.gmra.mxu0 %vm216_vm6, %v419_v8 }
 0x5b8   :  { %1369 = vmatpush3.msra.mxu0 %v1646_v4  ;;  %1376 = vmatprep.mubr.msk.f32.mxu0 %vm1579_vm0, %v1578_v0 }
 0x5b9   :  { %1370 = vmatprep.subr.mxu0 %v1578_v0 }
 0x5ba   :  { %1371 = vmatpush3.msra.mxu0 %v1654_v6 }
 0x5bb   :  { %1372 = vmatprep.subr.mxu0 %v1578_v0 }
 0x5bc   :  { %1373 = vmatpush3.msra.mxu0 %v1665_v9 }
 0x5bd   :  { %1374 = vmatprep.subr.mxu0 %v1578_v0 }
 0x5be   :  { %1375 = vmatpush3.msra.mxu0 %v1672_v10 }
 0x5bf   :  { %1390 = vmatprep.subr.mxu0 %v1578_v0 }
 0x677   :  { %v488_v11 = vpop.f32.mrf.mxu0 }
 0x678   :  { %v492_v12 = vadd.f32 %v488_v11, %v1714_v21 }
 0x679   :  { %v1356_v13 = vpop.f32.mrf.mxu0 }
 0x67a   :  { %v1225_v14 = vmul.f32 -1.442695, %v492_v12 }
 0x67c   :  { %1482 = vpow2.f32 %v1225_v14 }
 0x67d   :  { %1484 = vtanh.f32 %v492_v12 }
 0x689   :  { %v1483_v15 = vpop.eup %1482 }
 0x68a   :  { %v497_v16 = vadd.f32 1.0, %v1483_v15  ;;  %v1485_v17 = vpop.eup %1484 }
 0x68c   :  { %1486 = vrcp.f32 %v497_v16 }
 0x699   :  { %v1487_v18 = vpop.eup %1486 }
 0x69a   :  { %v500_v20 = vsel %vm1724_vm5, %v1485_v17, %v1487_v18 }
 0x69b   :  { %503 = vrot.lane.b32.xlu0 %v500_v20, %s1580_s3  ;;  %v501_v26 = vmul.f32 %v500_v20, %v410_v2 }
 0x70d   :  { %v504_v22 = vpop.permute.xlu0 %503 }
 0x70e   :  { %v506_v24 = vmul.f32 %v504_v22, %v500_v20 }
 0x710   :  { %508 = vrot.lane.b32.xlu1 %v506_v24, %s1581_s11 }
 0x782   :  { %v509_v21 = vpop.permute.xlu1 %508 }
 0x783   :  { %v511_v28 = vadd.f32 %v509_v21, %v501_v26 }
 0x785   :  { %1488 = vtanh.f32 %v511_v28 }
 0x792   :  { %v1489_v29 = vpop.eup %1488 }
 0x793   :  { %514 = vrot.lane.b32.xlu0 %v1489_v29, %s1580_s3 }
 0x805   :  { %v515_v31 = vpop.permute.xlu0 %514 }
 0x806   :  { %v517_v32 = vmul.f32 %v515_v31, %v500_v20 }
 0x808   :  { %519 = vrot.lane.b32.xlu1 %v517_v32, %s1581_s11 }
 0x87a   :  { %v520_v33 = vpop.permute.xlu1 %519 }
 0x87b   :  { %1366 = vmatmul.mubr.msk.f32.vlgmr.msra.gmra.mxu1 %vm216_vm6, %v520_v33 }
 0x87c   :  { %1380 = vmatpush3.msra.mxu1 %v1646_v4  ;;  %1387 = vmatprep.mubr.msk.f32.mxu1 %vm1579_vm0, %v1578_v0 }
 0x87d   :  { %1381 = vmatprep.subr.mxu1 %v1578_v0 }
 0x87e   :  { %1382 = vmatpush3.msra.mxu1 %v1654_v6 }
 0x87f   :  { %1383 = vmatprep.subr.mxu1 %v1578_v0 }
 0x880   :  { %1384 = vmatpush3.msra.mxu1 %v1665_v9 }
 0x881   :  { %1385 = vmatprep.subr.mxu1 %v1578_v0 }
 0x882   :  { %1386 = vmatpush3.msra.mxu1 %v1672_v10 }
 0x883   :  { %1401 = vmatprep.subr.mxu1 %v1578_v0 }
 0x93b   :  { %v589_v34 = vpop.f32.mrf.mxu1 }
 0x93c   :  { %v593_v35 = vadd.f32 %v589_v34, %v1712_v19 }
 0x93d   :  { %v1367_v36 = vpop.f32.mrf.mxu1 }
 0x93e   :  { %v1227_v37 = vmul.f32 -1.442695, %v593_v35 }
 0x940   :  { %1490 = vpow2.f32 %v1227_v37 }
 0x941   :  { %1492 = vtanh.f32 %v593_v35 }
 0x94d   :  { %v1491_v38 = vpop.eup %1490 }
 0x94e   :  { %v598_v40 = vadd.f32 1.0, %v1491_v38  ;;  %v1493_v41 = vpop.eup %1492 }
 0x950   :  { %1494 = vrcp.f32 %v598_v40 }
 0x95d   :  { %v1495_v42 = vpop.eup %1494 }
 0x95e   :  { %v601_v43 = vsel %vm1724_vm5, %v1493_v41, %v1495_v42 }
 0x95f   :  { %604 = vrot.lane.b32.xlu0 %v601_v43, %s1580_s3  ;;  %v602_v46 = vmul.f32 %v601_v43, %v511_v28 }
 0x9d1   :  { %v605_v44 = vpop.permute.xlu0 %604 }
 0x9d2   :  { %v607_v45 = vmul.f32 %v605_v44, %v601_v43 }
 0x9d4   :  { %609 = vrot.lane.b32.xlu1 %v607_v45, %s1581_s11 }
 0xa46   :  { %v610_v19 = vpop.permute.xlu1 %609 }
 0xa47   :  { %v612_v47 = vadd.f32 %v610_v19, %v602_v46 }
 0xa49   :  { %1496 = vtanh.f32 %v612_v47 }
 0xa56   :  { %v1497_v48 = vpop.eup %1496 }
 0xa57   :  { %615 = vrot.lane.b32.xlu0 %v1497_v48, %s1580_s3 }
 0xac9   :  { %v616_v49 = vpop.permute.xlu0 %615 }
 0xaca   :  { %v618_v50 = vmul.f32 %v616_v49, %v601_v43 }
 0xacc   :  { %620 = vrot.lane.b32.xlu1 %v618_v50, %s1581_s11 }
 0xb3e   :  { %v621_v51 = vpop.permute.xlu1 %620 }
 0xb3f   :  { %1377 = vmatmul.mubr.msk.f32.vlgmr.msra.gmra.mxu0 %vm216_vm6, %v621_v51 }
 0xb40   :  { %1391 = vmatpush3.msra.mxu0 %v1646_v4  ;;  %1398 = vmatprep.mubr.msk.f32.mxu0 %vm1579_vm0, %v1578_v0 }
 0xb41   :  { %1392 = vmatprep.subr.mxu0 %v1578_v0 }
 0xb42   :  { %1393 = vmatpush3.msra.mxu0 %v1654_v6 }
 0xb43   :  { %1394 = vmatprep.subr.mxu0 %v1578_v0 }
 0xb44   :  { %1395 = vmatpush3.msra.mxu0 %v1665_v9 }
 0xb45   :  { %1396 = vmatprep.subr.mxu0 %v1578_v0 }
 0xb46   :  { %1397 = vmatpush3.msra.mxu0 %v1672_v10 }
 0xb47   :  { %1412 = vmatprep.subr.mxu0 %v1578_v0 }
 0xbff   :  { %v690_v52 = vpop.f32.mrf.mxu0 }
 0xc00   :  { %v694_v53 = vadd.f32 %v690_v52, %v1718_v25 }
 0xc01   :  { %v1378_v54 = vpop.f32.mrf.mxu0 }
 0xc02   :  { %v1229_v55 = vmul.f32 -1.442695, %v694_v53 }
 0xc04   :  { %1498 = vpow2.f32 %v1229_v55 }
 0xc05   :  { %1500 = vtanh.f32 %v694_v53 }
 0xc11   :  { %v1499_v56 = vpop.eup %1498 }
 0xc12   :  { %v699_v57 = vadd.f32 1.0, %v1499_v56  ;;  %v1501_v58 = vpop.eup %1500 }
 0xc14   :  { %1502 = vrcp.f32 %v699_v57 }
 0xc21   :  { %v1503_v59 = vpop.eup %1502 }
 0xc22   :  { %v702_v60 = vsel %vm1724_vm5, %v1501_v58, %v1503_v59  ;;  %v1026_v58 = vld [vmem:[#allocation4 + $0x18] sm:$0xff]  ;;  %v1025_v59 = vld [vmem:[#allocation4 + $0x10] sm:$0xff] }
 0xc23   :  { %705 = vrot.lane.b32.xlu0 %v702_v60, %s1580_s3  ;;  %v703_v63 = vmul.f32 %v702_v60, %v612_v47 }
 0xc95   :  { %v706_v61 = vpop.permute.xlu0 %705 }
 0xc96   :  { %v708_v62 = vmul.f32 %v706_v61, %v702_v60 }
 0xc98   :  { %710 = vrot.lane.b32.xlu1 %v708_v62, %s1581_s11  ;;  %v1042_v62 = vld [vmem:[%s1925_s6 + $0x78] sm:$0xff] }
 0xd0a   :  { %v711_v25 = vpop.permute.xlu1 %710 }
 0xd0b   :  { %v713_v1 = vadd.f32 %v711_v25, %v703_v63  ;;  %v1041_v63 = vld [vmem:[%s1925_s6 + $0x70] sm:$0xff]  ;;  %v1040_v25 = vld [vmem:[%s1925_s6 + $0x68] sm:$0xff] }
 0xd0d   :  { %1504 = vtanh.f32 %v713_v1 }
 0xd1a   :  { %v1505_v2 = vpop.eup %1504 }
 0xd1b   :  { %716 = vrot.lane.b32.xlu0 %v1505_v2, %s1580_s3  ;;  %v1038_v2 = vld [vmem:[%s1925_s6 + $0x58] sm:$0xff] }
 0xd8d   :  { %v717_v3 = vpop.permute.xlu0 %716 }
 0xd8e   :  { %v719_v5 = vmul.f32 %v717_v3, %v702_v60  ;;  %v1024_v60 = vld [vmem:[#allocation4 + $0x8] sm:$0xff] }
 0xd90   :  { %721 = vrot.lane.b32.xlu1 %v719_v5, %s1581_s11  ;;  %v1037_v5 = vld [vmem:[%s1925_s6 + $0x50] sm:$0xff] }
 0xe02   :  { %v722_v7 = vpop.permute.xlu1 %721 }
 0xe03   :  { %1388 = vmatmul.mubr.msk.f32.vlgmr.msra.gmra.mxu1 %vm216_vm6, %v722_v7 }
 0xe04   :  { %1402 = vmatpush3.msra.mxu1 %v1646_v4  ;;  %1409 = vmatprep.mubr.msk.f32.mxu1 %vm1579_vm0, %v1578_v0 }
 0xe05   :  { %1403 = vmatprep.subr.mxu1 %v1578_v0 }
 0xe06   :  { %1404 = vmatpush3.msra.mxu1 %v1654_v6 }
 0xe07   :  { %1405 = vmatprep.subr.mxu1 %v1578_v0 }
 0xe08   :  { %1406 = vmatpush3.msra.mxu1 %v1665_v9 }
 0xe09   :  { %1407 = vmatprep.subr.mxu1 %v1578_v0 }
 0xe0a   :  { %1408 = vmatpush3.msra.mxu1 %v1672_v10 }
 0xe0b   :  { %1423 = vmatprep.subr.mxu1 %v1578_v0 }
 0xec3   :  { %v791_v8 = vpop.f32.mrf.mxu1 }
 0xec4   :  { %v795_v4 = vadd.f32 %v791_v8, %v1716_v23  ;;  %v1036_v8 = vld [vmem:[%s1925_s6 + $0x48] sm:$0xff] }
 0xec5   :  { %v1389_v11 = vpop.f32.mrf.mxu1 }
 0xec6   :  { %v1231_v12 = vmul.f32 -1.442695, %v795_v4  ;;  %v1035_v11 = vld [vmem:[%s1925_s6 + $0x40] sm:$0xff] }
 0xec8   :  { %1506 = vpow2.f32 %v1231_v12  ;;  %v1034_v12 = vld [vmem:[%s1925_s6 + $0x38] sm:$0xff] }
 0xec9   :  { %1508 = vtanh.f32 %v795_v4 }
 0xed5   :  { %v1507_v13 = vpop.eup %1506 }
 0xed6   :  { %v800_v14 = vadd.f32 1.0, %v1507_v13  ;;  %v1509_v6 = vpop.eup %1508  ;;  %v1033_v13 = vld [vmem:[%s1925_s6 + $0x30] sm:$0xff] }
 0xed8   :  { %1510 = vrcp.f32 %v800_v14  ;;  %v1032_v14 = vld [vmem:[%s1925_s6 + $0x28] sm:$0xff] }
 0xee5   :  { %v1511_v15 = vpop.eup %1510 }
 0xee6   :  { %v803_v9 = vsel %vm1724_vm5, %v1509_v6, %v1511_v15  ;;  %v1031_v6 = vld [vmem:[%s1925_s6 + $0x20] sm:$0xff]  ;;  %v1030_v15 = vld [vmem:[%s1925_s6 + $0x18] sm:$0xff] }
 0xee7   :  { %806 = vrot.lane.b32.xlu0 %v803_v9, %s1580_s3  ;;  %v804_v17 = vmul.f32 %v803_v9, %v713_v1  ;;  %v1039_v1 = vld [vmem:[%s1925_s6 + $0x60] sm:$0xff] }
 0xf59   :  { %v807_v10 = vpop.permute.xlu0 %806 }
 0xf5a   :  { %v809_v16 = vmul.f32 %v807_v10, %v803_v9  ;;  %v1029_v10 = vld [vmem:[%s1925_s6 + $0x10] sm:$0xff] }
 0xf5c   :  { %811 = vrot.lane.b32.xlu1 %v809_v16, %s1581_s11  ;;  %v1028_v16 = vld [vmem:[%s1925_s6 + $0x8] sm:$0xff] }
 0xfce   :  { %v812_v23 = vpop.permute.xlu1 %811 }
 0xfcf   :  { %v814_v18 = vadd.f32 %v812_v23, %v804_v17  ;;  %v1027_v17 = vld [vmem:[%s1925_s6] sm:$0xff] }
 0xfd0   :  { %v1236_v23 = vld [vmem:[%s1924_s5] ss:$0 sm:$0xff] }
 0xfd1   :  { %1512 = vtanh.f32 %v814_v18 }
 0xfde   :  { %v1513_v20 = vpop.eup %1512 }
 0xfdf   :  { %817 = vrot.lane.b32.xlu0 %v1513_v20, %s1580_s3 }
0x1051   :  { %v818_v22 = vpop.permute.xlu0 %817 }
0x1052   :  { %v820_v24 = vmul.f32 %v818_v22, %v803_v9 }
0x1054   :  { %822 = vrot.lane.b32.xlu1 %v820_v24, %s1581_s11 }
0x10c6   :  { %v823_v26 = vpop.permute.xlu1 %822 }
0x10c7   :  { %1399 = vmatmul.mubr.msk.f32.vlgmr.msra.gmra.mxu0 %vm216_vm6, %v823_v26  ;;  %v1238_v26 = vld [vmem:[%s1926_s7] ss:$0 sm:$0xff] }
0x10c8   :  { %1420 = vmatprep.mubr.msk.f32.mxu0 %vm1579_vm0, %v1578_v0  ;;  %1413 = vmatpush3.msra.mxu0 %v1026_v58 }
0x10c9   :  { %1414 = vmatprep.subr.mxu0 %v1578_v0 }
0x10ca   :  { %1415 = vmatpush3.msra.mxu0 %v1025_v59 }
0x10cb   :  { %1416 = vmatprep.subr.mxu0 %v1578_v0 }
0x10cc   :  { %1417 = vmatpush3.msra.mxu0 %v1024_v60 }
0x10cd   :  { %1418 = vmatprep.subr.mxu0 %v1578_v0 }
0x10ce   :  { %1419 = vmatpush3.msra.mxu0 %v1023_v39 }
0x1187   :  { %v892_v21 = vpop.f32.mrf.mxu0 }
0x1188   :  { %v896_v28 = vadd.f32 %v892_v21, %v1722_v30 }
0x1189   :  { %v1400_v29 = vpop.f32.mrf.mxu0 }
0x118a   :  { %v1233_v31 = vmul.f32 -1.442695, %v896_v28 }
0x118c   :  { %1514 = vpow2.f32 %v1233_v31 }
0x118d   :  { %1516 = vtanh.f32 %v896_v28 }
0x1199   :  { %v1515_v32 = vpop.eup %1514 }
0x119a   :  { %v901_v33 = vadd.f32 1.0, %v1515_v32  ;;  %v1517_v34 = vpop.eup %1516 }
0x119c   :  { %1518 = vrcp.f32 %v901_v33 }
0x11a9   :  { %v1519_v35 = vpop.eup %1518 }
0x11aa   :  { %v904_v36 = vsel %vm1724_vm5, %v1517_v34, %v1519_v35 }
0x11ab   :  { %907 = vrot.lane.b32.xlu0 %v904_v36, %s1580_s3  ;;  %v905_v40 = vmul.f32 %v904_v36, %v814_v18 }
0x121d   :  { %v908_v37 = vpop.permute.xlu0 %907 }
0x121e   :  { %v910_v38 = vmul.f32 %v908_v37, %v904_v36 }
0x1220   :  { %912 = vrot.lane.b32.xlu1 %v910_v38, %s1581_s11 }
0x1292   :  { %v913_v30 = vpop.permute.xlu1 %912 }
0x1293   :  { %v915_v41 = vadd.f32 %v913_v30, %v905_v40 }
0x1295   :  { %1520 = vtanh.f32 %v915_v41 }
0x12a2   :  { %v1521_v42 = vpop.eup %1520 }
0x12a3   :  { %918 = vrot.lane.b32.xlu0 %v1521_v42, %s1580_s3 }
0x1315   :  { %v919_v43 = vpop.permute.xlu0 %918 }
0x1316   :  { %v921_v44 = vmul.f32 %v919_v43, %v904_v36 }
0x1318   :  { %923 = vrot.lane.b32.xlu1 %v921_v44, %s1581_s11 }
0x138a   :  { %v924_v45 = vpop.permute.xlu1 %923 }
0x138b   :  { %1410 = vmatmul.mubr.msk.f32.vlgmr.msra.gmra.mxu1 %vm216_vm6, %v924_v45 }
0x138c   :  { %1455 = vmatprep.mubr.msk.f32.mxu1 %vm1579_vm0, %v1578_v0  ;;  %1424 = vmatpush3.msra.mxu1 %v1042_v62 }
0x138d   :  { %1425 = vmatprep.subr.mxu1 %v1578_v0 }
0x138e   :  { %1426 = vmatpush3.msra.mxu1 %v1041_v63 }
0x138f   :  { %1427 = vmatprep.subr.mxu1 %v1578_v0 }
0x1390   :  { %1428 = vmatpush3.msra.mxu1 %v1040_v25 }
0x1391   :  { %1429 = vmatprep.subr.mxu1 %v1578_v0 }
0x1392   :  { %1430 = vmatpush3.msra.mxu1 %v1039_v1 }
0x1393   :  { %1431 = vmatprep.subr.mxu1 %v1578_v0 }
0x1394   :  { %1432 = vmatpush3.msra.mxu1 %v1038_v2 }
0x1395   :  { %1433 = vmatprep.subr.mxu1 %v1578_v0 }
0x1396   :  { %1434 = vmatpush3.msra.mxu1 %v1037_v5 }
0x1397   :  { %1435 = vmatprep.subr.mxu1 %v1578_v0 }
0x1398   :  { %1436 = vmatpush3.msra.mxu1 %v1036_v8 }
0x1399   :  { %1437 = vmatprep.subr.mxu1 %v1578_v0 }
0x139a   :  { %1438 = vmatpush3.msra.mxu1 %v1035_v11 }
0x139b   :  { %1439 = vmatprep.subr.mxu1 %v1578_v0 }
0x139c   :  { %1440 = vmatpush3.msra.mxu1 %v1034_v12 }
0x139d   :  { %1441 = vmatprep.subr.mxu1 %v1578_v0 }
0x139e   :  { %1442 = vmatpush3.msra.mxu1 %v1033_v13 }
0x139f   :  { %1443 = vmatprep.subr.mxu1 %v1578_v0 }
0x13a0   :  { %1444 = vmatpush3.msra.mxu1 %v1032_v14 }
0x13a1   :  { %1445 = vmatprep.subr.mxu1 %v1578_v0 }
0x13a2   :  { %1446 = vmatpush3.msra.mxu1 %v1031_v6 }
0x13a3   :  { %1447 = vmatprep.subr.mxu1 %v1578_v0 }
0x13a4   :  { %1448 = vmatpush3.msra.mxu1 %v1030_v15 }
0x13a5   :  { %1449 = vmatprep.subr.mxu1 %v1578_v0 }
0x13a6   :  { %1450 = vmatpush3.msra.mxu1 %v1029_v10 }
0x13a7   :  { %1451 = vmatprep.subr.mxu1 %v1578_v0 }
0x13a8   :  { %1452 = vmatpush3.msra.mxu1 %v1028_v16 }
0x13a9   :  { %1453 = vmatprep.subr.mxu1 %v1578_v0 }
0x13aa   :  { %1454 = vmatpush3.msra.mxu1 %v1027_v17 }
0x144b   :  { %v993_v46 = vpop.f32.mrf.mxu1 }
0x144c   :  { %v997_v19 = vadd.f32 %v993_v46, %v1720_v27 }
0x144d   :  { %v1411_v47 = vpop.f32.mrf.mxu1 }
0x144e   :  { %v1235_v48 = vmul.f32 -1.442695, %v997_v19 }
0x1450   :  { %1522 = vpow2.f32 %v1235_v48 }
0x1451   :  { %1524 = vtanh.f32 %v997_v19 }
0x145d   :  { %v1523_v49 = vpop.eup %1522 }
0x145e   :  { %v1002_v50 = vadd.f32 1.0, %v1523_v49  ;;  %v1525_v51 = vpop.eup %1524 }
0x1460   :  { %1526 = vrcp.f32 %v1002_v50 }
0x146d   :  { %v1527_v52 = vpop.eup %1526 }
0x146e   :  { %v1005_v53 = vsel %vm1724_vm5, %v1525_v51, %v1527_v52 }
0x146f   :  { %1008 = vrot.lane.b32.xlu0 %v1005_v53, %s1580_s3  ;;  %v1006_v56 = vmul.f32 %v1005_v53, %v915_v41 }
0x14e1   :  { %v1009_v54 = vpop.permute.xlu0 %1008 }
0x14e2   :  { %v1011_v55 = vmul.f32 %v1009_v54, %v1005_v53 }
0x14e4   :  { %1013 = vrot.lane.b32.xlu1 %v1011_v55, %s1581_s11 }
0x1556   :  { %v1014_v27 = vpop.permute.xlu1 %1013 }
0x1557   :  { %v1016_v57 = vadd.f32 %v1014_v27, %v1006_v56 }
0x1559   :  { %1528 = vtanh.f32 %v1016_v57 }
0x1566   :  { %v1529_v61 = vpop.eup %1528 }
0x1567   :  { %1019 = vrot.lane.b32.xlu0 %v1529_v61, %s1580_s3 }
0x15d9   :  { %v1020_v3 = vpop.permute.xlu0 %1019 }
0x15da   :  { %v1022_v7 = vmul.f32 %v1020_v3, %v1005_v53 }
0x15dc   :  { %v1043_v4 = vmax.f32 %v1022_v7, 0.0 }
0x15de   :  { %1052 = vrot.lane.b32.xlu1 %v1043_v4, %s1581_s11 }
0x1650   :  { %v1053_v9 = vpop.permute.xlu1 %1052 }
0x1651   :  { %1421 = vmatmul.mubr.msk.f32.vlgmr.msra.gmra.mxu0 %vm216_vm6, %v1053_v9 }
0x1711   :  { %v1122_v18 = vpop.f32.mrf.mxu0 }
0x1712   :  { %v1123_v20 = vadd.f32 %v1236_v23, %v1122_v18 }
0x1713   :  { %v1422_v22 = vpop.f32.mrf.mxu0 }
0x1714   :  { %v1126_v24 = vmax.f32 %v1123_v20, 0.0 }
0x1716   :  { %1456 = vmatmul.mubr.f32.vlgmr.msra.gmra.mxu1 %v1126_v24 }
0x17d6   :  { %v1200_v21 = vpop.f32.mrf.mxu1 }
0x17d7   :  { %v1201_v0 = vadd.f32 %v1238_v26, %v1200_v21 }
0x17d8   :  { %v1457_v28 = vpop.f32.mrf.mxu1 }
0x17d9   :  { %1204 = vst [vmem:[%s1927_s8] sm:$0xff] %v1201_v0 }
0x17da   :  { %1209 = vsyncpa [#allocation3], 1 }
0x17db   :  { %1210 = vsyncpa [#allocation5], 1 }

</bundles_post_ra>
